<compile_context>
chip_gen: v5e
topology: v5e:2x2
jax: 0.10.0
libtpu: 0.0.40
codegen_flags: <defaults>
</compile_context>

<pallas_src>
import functools

import jax
import jax.numpy as jnp
from jax.experimental import pallas as pl
from jax.experimental.pallas import tpu as pltpu

_LANES = 128
# 2 MiB per input block: 4096 rows f32 / 8192 rows bf16 (x 128 lanes).
_BLOCK_ROWS_F32 = 4096
_BLOCK_ROWS_BF16 = 8192


def _cdiv(a, b):
    return -(-a // b)


def _round_up(x, m):
    return _cdiv(x, m) * m


def _masked_mse_kernel(pred_ref, targ_ref, sum_ref, cnt_ref, acc_sum, acc_cnt,
                       *, rows, block_rows):
    i = pl.program_id(0)

    @pl.when(i == 0)
    def _():
        acc_sum[...] = jnp.zeros_like(acc_sum)
        acc_cnt[...] = jnp.zeros_like(acc_cnt)

    t = targ_ref[...].astype(jnp.float32)
    p = pred_ref[...].astype(jnp.float32)

    def accumulate(valid):
        # Select BEFORE squaring so garbage rows of a partial edge block (stale
        # VMEM, possibly NaN/Inf) never reach the accumulators unmasked.
        d = jnp.where(valid, t - p, 0.0)
        sq = d * d
        cn = valid.astype(jnp.int32)
        # (block_rows, 128) -> (8, 128) partial reduce: the reshape splits the
        # sublane axis on vreg-tile boundaries; the axis-0 sum is plain VPU adds.
        acc_sum[...] += jnp.sum(sq.reshape(block_rows // 8, 8, _LANES), axis=0)
        acc_cnt[...] += jnp.sum(cn.reshape(block_rows // 8, 8, _LANES), axis=0)

    if rows % block_rows == 0:
        # All blocks are full: no row mask needed anywhere (hot path only).
        accumulate(t > 0)
    else:
        # Only the last block can be partial; keep the iota row mask off the hot path.
        is_edge = i == pl.num_programs(0) - 1

        @pl.when(jnp.logical_not(is_edge))
        def _():
            accumulate(t > 0)

        @pl.when(is_edge)
        def _():
            row_idx = (i * block_rows
                       + jax.lax.broadcasted_iota(jnp.int32, (block_rows, _LANES), 0))
            accumulate(jnp.logical_and(t > 0, row_idx < rows))

    @pl.when(i == pl.num_programs(0) - 1)
    def _():
        # Single cross-lane/sublane reduce per kernel, then scalar SMEM writeback.
        sum_ref[0, 0] = jnp.sum(acc_sum[...])
        cnt_ref[0, 0] = jnp.sum(acc_cnt[...])


def masked_mse_loss(pred, target, *, block_rows=None):
    """Pallas TPU implementation of MaskedMSELoss.forward(pred, target)."""
    assert pred.ndim == target.ndim, "inconsistent dimensions"
    assert pred.shape == target.shape, "inconsistent shapes"

    # Keep 16-bit inputs 16-bit through HBM (kernel upcasts to f32); otherwise f32.
    if pred.dtype == jnp.bfloat16 and target.dtype == jnp.bfloat16:
        work_dtype = jnp.bfloat16
    else:
        work_dtype = jnp.float32

    pred = pred.astype(work_dtype).reshape(-1)
    target = target.astype(work_dtype).reshape(-1)

    total = pred.shape[0]
    itemsize = jnp.dtype(work_dtype).itemsize

    # Lane-aligned prefix goes through the kernel; the (< 128-element) remainder is
    # reduced with a tiny jnp expression below. No jnp.pad of the full array.
    main = (total // _LANES) * _LANES
    rows = main // _LANES

    kernel_sum = jnp.float32(0.0)
    kernel_cnt = jnp.int32(0)
    if rows > 0:
        if block_rows is None:
            block_rows = _BLOCK_ROWS_BF16 if itemsize == 2 else _BLOCK_ROWS_F32
        # Multiple of 16 covers both f32 (8) and bf16 (16) sublane packing; never
        # bigger than needed for small inputs.
        block_rows = min(block_rows, _round_up(rows, 16))
        block_rows = max(16, _round_up(block_rows, 16))
        num_blocks = _cdiv(rows, block_rows)

        pred2d = pred[:main].reshape(rows, _LANES)    # free reshape when main == total
        targ2d = target[:main].reshape(rows, _LANES)

        kernel = functools.partial(
            _masked_mse_kernel, rows=rows, block_rows=block_rows)

        part_sum, part_cnt = pl.pallas_call(
            kernel,
            out_shape=(
                jax.ShapeDtypeStruct((1, 1), jnp.float32),
                jax.ShapeDtypeStruct((1, 1), jnp.int32),
            ),
            grid_spec=pltpu.PrefetchScalarGridSpec(
                num_scalar_prefetch=0,
                grid=(num_blocks,),
                in_specs=[
                    pl.BlockSpec((block_rows, _LANES), lambda i: (i, 0)),
                    pl.BlockSpec((block_rows, _LANES), lambda i: (i, 0)),
                ],
                out_specs=(
                    pl.BlockSpec((1, 1), lambda i: (0, 0),
                                 memory_space=pltpu.MemorySpace.SMEM),
                    pl.BlockSpec((1, 1), lambda i: (0, 0),
                                 memory_space=pltpu.MemorySpace.SMEM),
                ),
                scratch_shapes=[
                    pltpu.VMEM((8, _LANES), jnp.float32),   # partial sum of squares
                    pltpu.VMEM((8, _LANES), jnp.int32),     # partial valid count
                ],
            ),
            compiler_params=pltpu.CompilerParams(
                dimension_semantics=("arbitrary",),
            ),
            cost_estimate=pl.CostEstimate(
                flops=3 * main, transcendentals=0,
                bytes_accessed=2 * main * itemsize),
        )(pred2d, targ2d)
        kernel_sum = part_sum[0, 0]
        kernel_cnt = part_cnt[0, 0]

    tail_sum = jnp.float32(0.0)
    tail_cnt = jnp.int32(0)
    if main < total:   # static Python branch; tail has < 128 elements
        t_tail = target[main:].astype(jnp.float32)
        p_tail = pred[main:].astype(jnp.float32)
        valid = t_tail > 0
        d = jnp.where(valid, t_tail - p_tail, 0.0)
        tail_sum = jnp.sum(d * d)
        tail_cnt = jnp.sum(valid.astype(jnp.int32))

    total_sum = kernel_sum + tail_sum
    total_cnt = kernel_cnt + tail_cnt
    # NaN when no element has target > 0 — same as diff[mask].pow(2).mean() on empty.
    return total_sum / total_cnt.astype(jnp.float32)


def _reference(pred, target):
    mask = target > 0
    diff = jnp.where(mask, target.astype(jnp.float32) - pred.astype(jnp.float32), 0.0)
    return jnp.sum(diff * diff) / jnp.sum(mask.astype(jnp.float32))


if __name__ == "__main__":
    key = jax.random.PRNGKey(0)
    k1, k2, k3, k4 = jax.random.split(key, 4)

    # NCHW, small shapes; target has a mix of positive / non-positive values so the
    # valid mask is non-trivial (like sparse depth maps in the original use case).
    B, C, H, W = 2, 4, 16, 16
    pred = jax.random.normal(k1, (B, C, H, W), dtype=jnp.float32)
    target = jax.random.normal(k2, (B, C, H, W), dtype=jnp.float32)

    loss = masked_mse_loss(pred, target)
    jax.block_until_ready(loss)
    ref = _reference(pred, target)
    assert jnp.allclose(loss, ref, rtol=1e-5, atol=1e-6), (loss, ref)

    # Non-lane-aligned total: exercises the partial edge block + jnp tail path.
    pred2 = jax.random.normal(k3, (2, 3, 50, 50), dtype=jnp.float32)
    target2 = jax.random.normal(k4, (2, 3, 50, 50), dtype=jnp.float32)
    loss2 = masked_mse_loss(pred2, target2)
    jax.block_until_ready(loss2)
    ref2 = _reference(pred2, target2)
    assert jnp.allclose(loss2, ref2, rtol=1e-5, atol=1e-6), (loss2, ref2)

    print("KERNEL_OK")
</pallas_src>

<mosaic_0001>
module attributes {stable_mosaic.version = 11 : i64} {
  func.func @_masked_mse_kernel(%arg0: i32, %arg1: memref<16x128xf32, #tpu.memory_space<vmem>>, %arg2: memref<16x128xf32, #tpu.memory_space<vmem>>, %arg3: memref<1x1xf32, #tpu.memory_space<smem>>, %arg4: memref<1x1xi32, #tpu.memory_space<smem>>, %arg5: memref<8x128xf32, #tpu.memory_space<vmem>>, %arg6: memref<8x128xi32, #tpu.memory_space<vmem>>) attributes {dimension_semantics = [#tpu.dimension_semantics<arbitrary>], iteration_bounds = array<i64: 1>, scalar_prefetch = 0 : i64, scratch_operands = 2 : i64, tpu.core_type = #tpu.core_type<tc>, window_params = [{transform_indices = @transform_0, window_bounds = array<i64: 16, 128>}, {transform_indices = @transform_1, window_bounds = array<i64: 16, 128>}, {transform_indices = @transform_2, window_bounds = array<i64: 1, 1>}, {transform_indices = @transform_3, window_bounds = array<i64: 1, 1>}]} {
    %c0_i32 = arith.constant 0 : i32
    %0 = arith.cmpi eq, %arg0, %c0_i32 : i32
    %1 = arith.extui %0 : i1 to i32
    %c0_i32_0 = arith.constant 0 : i32
    %2 = arith.cmpi ne, %1, %c0_i32_0 : i32
    scf.if %2 {
      %cst_17 = arith.constant 0.000000e+00 : f32
      %25 = vector.broadcast %cst_17 : f32 to vector<8x128xf32>
      %c0_18 = arith.constant 0 : index
      %c0_19 = arith.constant 0 : index
      %26 = vector.load %arg5[%c0_18, %c0_19] : memref<8x128xf32, #tpu.memory_space<vmem>>, vector<8x128xf32>
      tpu.vector_store %arg5[%c0_18, %c0_19], %25 {strides = array<i32>} : memref<8x128xf32, #tpu.memory_space<vmem>>, vector<8x128xf32>,
      %c0_i32_20 = arith.constant 0 : i32
      %27 = vector.broadcast %c0_i32_20 : i32 to vector<8x128xi32>
      %c0_21 = arith.constant 0 : index
      %c0_22 = arith.constant 0 : index
      %28 = vector.load %arg6[%c0_21, %c0_22] : memref<8x128xi32, #tpu.memory_space<vmem>>, vector<8x128xi32>
      tpu.vector_store %arg6[%c0_21, %c0_22], %27 {strides = array<i32>} : memref<8x128xi32, #tpu.memory_space<vmem>>, vector<8x128xi32>,
    } else {
    }
    %c0 = arith.constant 0 : index
    %c0_1 = arith.constant 0 : index
    %3 = vector.load %arg2[%c0, %c0_1] : memref<16x128xf32, #tpu.memory_space<vmem>>, vector<16x128xf32>
    %c0_2 = arith.constant 0 : index
    %c0_3 = arith.constant 0 : index
    %4 = vector.load %arg1[%c0_2, %c0_3] : memref<16x128xf32, #tpu.memory_space<vmem>>, vector<16x128xf32>
    %cst = arith.constant 0.000000e+00 : f32
    %5 = vector.broadcast %cst : f32 to vector<16x128xf32>
    %6 = arith.cmpf ogt, %3, %5 : vector<16x128xf32>
    %7 = arith.subf %3, %4 : vector<16x128xf32>
    %cst_4 = arith.constant 0.000000e+00 : f32
    %8 = vector.broadcast %cst_4 : f32 to vector<16x128xf32>
    %9 = arith.select %6, %7, %8 : vector<16x128xi1>, vector<16x128xf32>
    %10 = arith.mulf %9, %9 : vector<16x128xf32>
    %11 = arith.extui %6 : vector<16x128xi1> to vector<16x128xi32>
    %c0_5 = arith.constant 0 : index
    %c0_6 = arith.constant 0 : index
    %12 = vector.load %arg5[%c0_5, %c0_6] : memref<8x128xf32, #tpu.memory_space<vmem>>, vector<8x128xf32>
    %13 = vector.shape_cast %10 : vector<16x128xf32> to vector<2x8x128xf32>
    %cst_7 = arith.constant dense<0.000000e+00> : vector<8x128xf32>
    %14 = vector.multi_reduction <add>, %13, %cst_7 [0] : vector<2x8x128xf32> to vector<8x128xf32>
    %15 = arith.addf %12, %14 : vector<8x128xf32>
    %c0_8 = arith.constant 0 : index
    %c0_9 = arith.constant 0 : index
    %16 = vector.load %arg5[%c0_8, %c0_9] : memref<8x128xf32, #tpu.memory_space<vmem>>, vector<8x128xf32>
    tpu.vector_store %arg5[%c0_8, %c0_9], %15 {strides = array<i32>} : memref<8x128xf32, #tpu.memory_space<vmem>>, vector<8x128xf32>,
    %c0_10 = arith.constant 0 : index
    %c0_11 = arith.constant 0 : index
    %17 = vector.load %arg6[%c0_10, %c0_11] : memref<8x128xi32, #tpu.memory_space<vmem>>, vector<8x128xi32>
    %18 = vector.shape_cast %11 : vector<16x128xi32> to vector<2x8x128xi32>
    %cst_12 = arith.constant dense<0> : vector<8x128xi32>
    %19 = vector.multi_reduction <add>, %18, %cst_12 [0] : vector<2x8x128xi32> to vector<8x128xi32>
    %20 = arith.addi %17, %19 : vector<8x128xi32>
    %c0_13 = arith.constant 0 : index
    %c0_14 = arith.constant 0 : index
    %21 = vector.load %arg6[%c0_13, %c0_14] : memref<8x128xi32, #tpu.memory_space<vmem>>, vector<8x128xi32>
    tpu.vector_store %arg6[%c0_13, %c0_14], %20 {strides = array<i32>} : memref<8x128xi32, #tpu.memory_space<vmem>>, vector<8x128xi32>,
    %c0_i32_15 = arith.constant 0 : i32
    %22 = arith.cmpi eq, %arg0, %c0_i32_15 : i32
    %23 = arith.extui %22 : i1 to i32
    %c0_i32_16 = arith.constant 0 : i32
    %24 = arith.cmpi ne, %23, %c0_i32_16 : i32
    scf.if %24 {
      %c0_17 = arith.constant 0 : index
      %c0_18 = arith.constant 0 : index
      %25 = vector.load %arg5[%c0_17, %c0_18] : memref<8x128xf32, #tpu.memory_space<vmem>>, vector<8x128xf32>
      %26 = vector.shape_cast %25 : vector<8x128xf32> to vector<1x8x128xf32>
      %cst_19 = arith.constant dense<0.000000e+00> : vector<1xf32>
      %27 = vector.multi_reduction <add>, %26, %cst_19 [1, 2] : vector<1x8x128xf32> to vector<1xf32>
      %28 = vector.shape_cast %27 : vector<1xf32> to vector<1x1x1xf32>
      %29 = vector.extract %28[0, 0, 0] : f32 from vector<1x1x1xf32>
      %c0_20 = arith.constant 0 : index
      %c0_21 = arith.constant 0 : index
      %30 = memref.load %arg3[%c0_20, %c0_21] : memref<1x1xf32, #tpu.memory_space<smem>>
      memref.store %29, %arg3[%c0_20, %c0_21] : memref<1x1xf32, #tpu.memory_space<smem>>
      %c0_22 = arith.constant 0 : index
      %c0_23 = arith.constant 0 : index
      %31 = vector.load %arg6[%c0_22, %c0_23] : memref<8x128xi32, #tpu.memory_space<vmem>>, vector<8x128xi32>
      %32 = vector.shape_cast %31 : vector<8x128xi32> to vector<1x8x128xi32>
      %cst_24 = arith.constant dense<0> : vector<1xi32>
      %33 = vector.multi_reduction <add>, %32, %cst_24 [1, 2] : vector<1x8x128xi32> to vector<1xi32>
      %34 = vector.shape_cast %33 : vector<1xi32> to vector<1x1x1xi32>
      %35 = vector.extract %34[0, 0, 0] : i32 from vector<1x1x1xi32>
      %c0_25 = arith.constant 0 : index
      %c0_26 = arith.constant 0 : index
      %36 = memref.load %arg4[%c0_25, %c0_26] : memref<1x1xi32, #tpu.memory_space<smem>>
      memref.store %35, %arg4[%c0_25, %c0_26] : memref<1x1xi32, #tpu.memory_space<smem>>
    } else {
    }
    return
  }
  func.func @transform_0(%arg0: i32) -> (i32, i32) {
    %c0_i32 = arith.constant 0 : i32
    %c0_i32_0 = arith.constant 0 : i32
    return %arg0, %c0_i32 : i32, i32
  }
  func.func @transform_1(%arg0: i32) -> (i32, i32) {
    %c0_i32 = arith.constant 0 : i32
    %c0_i32_0 = arith.constant 0 : i32
    return %arg0, %c0_i32 : i32, i32
  }
  func.func @transform_2(%arg0: i32) -> (i32, i32) {
    %c0_i32 = arith.constant 0 : i32
    %c0_i32_0 = arith.constant 0 : i32
    %c0_i32_1 = arith.constant 0 : i32
    return %c0_i32, %c0_i32_0 : i32, i32
  }
  func.func @transform_3(%arg0: i32) -> (i32, i32) {
    %c0_i32 = arith.constant 0 : i32
    %c0_i32_0 = arith.constant 0 : i32
    %c0_i32_1 = arith.constant 0 : i32
    return %c0_i32, %c0_i32_0 : i32, i32
  }
}

</mosaic_0001>

<bundles_post_ra>
// kernel: tpu_custom_call.1
= control target key start
LH: loop header
LB: loop body
LE: loop exit
PB: predicated region body
PF: predicated region fallthrough
CT: control target
= control target key end

     0   :  { %9 = vsyncpa [#allocation5], 0  ;;  %s273_s0 = inlined_call_operand.hbm [shape: f32[16,128], index: 0, kind: input, shape index: {}]   ;;  %s274_s1 = inlined_call_operand.hbm [shape: f32[16,128], index: 1, kind: input, shape index: {}]   ;;  %s275_s2 = inlined_call_operand.hbm [shape: f32[1,1], index: 2, kind: output, shape index: {0}]   ;;  %s276_s3 = inlined_call_operand.hbm [shape: s32[1,1], index: 3, kind: output, shape index: {1}]  }
   0x1   :  { %10 = vsyncpa [#allocation8], 0 }
   0x2   :  { %11 = vsyncpa [#allocation6], 0 }
   0x3   :  { %12 = vsyncpa [#allocation11], 0  ;;  %s17_s14 = sshll.u32 %s273_s0, 4  ;;  %s234_s15 = smov [#allocation4]   ;;  %s18_s14 = int_to_ptr.hbm [resolvable:$true] %s17_s14 }
   0x4   :  { %s19_s16 = sshll.u32 %s234_s15, 4  ;;  %s30_s19 = sshll.u32 %s274_s1, 4  ;;  %s20_s16 = int_to_ptr.vmem [resolvable:$true] %s19_s16  ;;  %s31_s19 = int_to_ptr.hbm [resolvable:$true] %s30_s19 }
   0x5   :  { %s235_s20 = smov 128   ;;  %s236_s21 = smov 8  }
   0x6   :  { %25 = dma.hbm_to_vmem [thread:$0]  %s18_s14, 256, %s20_s16, [#allocation5], %s235_s20, %s235_s20, %s236_s21  }
   0x7   :  { %s237_s22 = smov [#allocation7]  }
   0x8   :  { %s32_s23 = sshll.u32 %s237_s22, 4  ;;  %s33_s23 = int_to_ptr.vmem [resolvable:$true] %s32_s23 }
   0x9   :  { %38 = dma.hbm_to_vmem [thread:$0]  %s31_s19, 256, %s33_s23, [#allocation8], %s235_s20, %s235_s20, %s236_s21  }
   0xa   :  { %226 = dma.done.wait [#allocation5], 256  }
   0xb   :  { %227 = vsyncadd [#allocation5], 4294967040 }
   0xc   :  { %228 = dma.done.wait [#allocation8], 256  }
   0xd   :  { %229 = vsyncadd [#allocation8], 4294967040  ;;  %v53_v0 = vld [vmem:[#allocation7] sm:$0xff]  ;;  %v54_v1 = vld [vmem:[#allocation7 + $0x8] sm:$0xff]  ;;  %v238_v5 = vmov 0   ;;  %s117_s24 = sshll.u32 %s275_s2, 4  ;;  %s118_s24 = int_to_ptr.hbm [resolvable:$true] %s117_s24 }
   0xe   :  { %v55_v2 = vld [vmem:[#allocation4] sm:$0xff]  ;;  %vm57_vm0 = vcmp.gt.f32.partialorder %v53_v0, 0.0  ;;  %vm58_vm1 = vcmp.gt.f32.partialorder %v54_v1, 0.0  ;;  %v56_v3 = vld [vmem:[#allocation4 + $0x8] sm:$0xff]  ;;  %s239_s26 = smov [#allocation9]   ;;  %s126_s29 = sshll.u32 %s276_s3, 4  ;;  %s127_s29 = int_to_ptr.hbm [resolvable:$true] %s126_s29 }
   0xf   :  { %v59_v4 = vsub.f32 %v53_v0, %v55_v2  ;;  %v65_v6 = vsel %vm57_vm0, 1, %v238_v5  ;;  %v66_v7 = vsel %vm58_vm1, 1, %v238_v5  ;;  %v60_v8 = vsub.f32 %v54_v1, %v56_v3  ;;  %s240_s4 = smov [#allocation10]  }
  0x10   :  { %v72_v9 = vadd.s32 %v66_v7, %v65_v6 }
  0x11   :  { %v61_v10 = vsel %vm57_vm0, %v59_v4, 0.0  ;;  %v62_v11 = vsel %vm58_vm1, %v60_v8, 0.0 }
  0x12   :  { %v63_v12 = vmul.f32 %v61_v10, %v61_v10  ;;  %v92_v13 = vshrl.u32 %v72_v9, 16  ;;  %v64_v14 = vmul.f32 %v62_v11, %v62_v11  ;;  %v91_v17 = vand.u32 65535, %v72_v9 }
  0x14   :  { %v94_v15 = vcvt.s32.f32 %v92_v13  ;;  %v68_v16 = vadd.f32 %v64_v14, %v63_v12  ;;  %v93_v18 = vcvt.s32.f32 %v91_v17 }
  0x16   :  { %97 = vadd.xlane.f32.xlu0 %v94_v15  ;;  %79 = vadd.xlane.f32.xlu1 %v68_v16 }
  0x1e   :  { %95 = vadd.xlane.f32.xlu0 %v93_v18 }
  0x89   :  { %v98_v19 = vpop.xlane.xlu0 %97  ;;  %v80_v20 = vpop.xlane.xlu1 %79 }
  0x8a   :  { %v81_v21 = vrot.slane %v80_v20, 4  ;;  %v100_v23 = vcvt.f32.s32 %v98_v19 }
  0x8c   :  { %v82_v22 = vadd.f32 %v81_v21, %v80_v20  ;;  %v101_v27 = vshll.u32 %v100_v23, 16 }
  0x8e   :  { %v83_v24 = vrot.slane %v82_v22, 2 }
  0x90   :  { %v84_v25 = vadd.f32 %v83_v24, %v82_v22 }
  0x91   :  { %v96_v26 = vpop.xlane.xlu0 %95 }
  0x92   :  { %v99_v28 = vcvt.f32.s32 %v96_v26  ;;  %v85_v29 = vrot.slane %v84_v25, 1 }
  0x94   :  { %v102_v30 = vadd.s32 %v101_v27, %v99_v28  ;;  %v86_v31 = vadd.f32 %v85_v29, %v84_v25 }
  0x96   :  { %v103_v32 = vrot.slane %v102_v30, 4  ;;  %143 = vpush %v86_v31 }
  0x98   :  { %v104_v33 = vadd.s32 %v103_v32, %v102_v30 }
  0x9a   :  { %v105_v34 = vrot.slane %v104_v33, 2 }
  0x9c   :  { %v106_v35 = vadd.s32 %v105_v34, %v104_v33 }
  0x9e   :  { %v107_v36 = vrot.slane %v106_v35, 1 }
  0xa0   :  { %v108_v37 = vadd.s32 %v107_v36, %v106_v35 }
  0xa2   :  { %145 = vpush %v108_v37 }
  0xc7   :  { %s144_s25 = spop %143 }
  0xc8   :  { %89 = sst [smem:[#allocation9]] %s144_s25 }
  0xc9   :  { %120 = dma.smem_to_hbm %s239_s26, 16, %s118_s24, [#allocation6]  }
  0xd3   :  { %s146_s30 = spop %145 }
  0xd4   :  { %111 = sst [smem:[#allocation10]] %s146_s30 }
  0xd5   :  { %129 = dma.smem_to_hbm %s240_s4, 16, %s127_s29, [#allocation11]  }
  0xd6   :  { %230 = dma.done.wait [#allocation6], 16  }
  0xd7   :  { %231 = vsyncadd [#allocation6], 4294967280 }
  0xd8   :  { %232 = dma.done.wait [#allocation11], 16  }
  0xd9   :  { %233 = vsyncadd [#allocation11], 4294967280 }
  0xda   :  { %138 = sfence }
  0xdb   :  { %139 = vsyncpa [#allocation5], 1 }
  0xdc   :  { %140 = vsyncpa [#allocation8], 1 }
  0xdd   :  { %141 = vsyncpa [#allocation6], 1 }
  0xde   :  { %142 = vsyncpa [#allocation11], 1 }

</bundles_post_ra>
